<compile_context>
chip_gen: v7x
topology: tpu7x:2x2x1
jax: 0.10.0
libtpu: 0.0.40
codegen_flags: <defaults>
</compile_context>

<pallas_src>
import functools

import jax
import jax.numpy as jnp
from jax import lax
from jax.experimental import pallas as pl
from jax.experimental.pallas import tpu as pltpu


def _lrn_kernel(x_ref, o_ref, *scratch, local_size, alpha, beta):
    # x_ref / o_ref: (C, TILE_HW) block for one (batch, hw-tile) grid point.
    xf = x_ref[...].astype(jnp.float32)
    x2 = xf * xf
    C, T = x2.shape
    pad = (local_size - 1) // 2

    if pad == 0:
        acc = x2
    else:
        pad_ref = scratch[0]                       # (C + 2*pad, TILE_HW) f32 scratch
        zeros_halo = jnp.zeros((pad, T), jnp.float32)
        pad_ref[0:pad, :] = zeros_halo             # top halo
        pad_ref[pad + C:, :] = zeros_halo          # bottom halo
        pad_ref[pad:pad + C, :] = x2               # payload
        # Window sum: output channel c accumulates pad_ref[c + k], k = 0..L-1,
        # i.e. x2[c - pad .. c + pad] with zero padding (count_include_pad=True).
        acc = pad_ref[0:C, :]
        for k in range(1, local_size):             # small static unrolled loop
            acc = acc + pad_ref[k:k + C, :]

    base = 1.0 + (alpha / float(local_size)) * acc  # base >= 1 for valid lanes
    if beta == 0.75:
        # base**(-0.75) == rsqrt(base**1.5): cheaper EUP ops than log+exp.
        inv_div = lax.rsqrt(base * jnp.sqrt(base))
    elif beta == 1.0:
        inv_div = 1.0 / base
    elif beta == 0.0:
        inv_div = jnp.ones_like(base)
    else:
        inv_div = jnp.exp((-beta) * jnp.log(base))  # general beta
    o_ref[...] = (xf * inv_div).astype(o_ref.dtype)


def _choose_tile(HW, C, pad, itemsize, target=1024):
    """Pick lane-tile size and report the VMEM footprint it implies."""
    LANE = 128
    if HW < LANE:
        tile = HW                                   # block == full dim (always legal)
    else:
        tile = min(target, (HW // LANE) * LANE)     # largest 128-multiple <= min(target, HW)

    def footprint(t):
        io = 2 * 2 * C * t * itemsize               # double-buffered input + output blocks
        scr = ((C + 2 * pad) * t * 4) if pad > 0 else 0   # f32 window scratch
        temps = 4 * C * t * 4                       # rough bound on live f32 temporaries
        return io + scr + temps

    BUDGET = 24 << 20                               # headroom under v7x 32 MiB scoped / 64 MiB phys
    while tile > LANE and footprint(tile) > BUDGET:
        tile -= LANE
    return tile, footprint(tile)


def lrn(x, *, local_size=1, alpha=1.0, beta=0.75, across_channels=True):
    """x: (N, C, H, W) -> (N, C, H, W), cross-channel LRN (PyTorch cuda-convnet style)."""
    assert across_channels, "only ACROSS_CHANNELS=True is implemented"
    assert local_size == 1 or local_size % 2 == 1, (
        "even local_size changes channel count under PyTorch AvgPool3d padding")
    N, C, H, W = x.shape
    HW = H * W
    pad = (local_size - 1) // 2
    itemsize = x.dtype.itemsize

    x3 = x.reshape(N, C, HW)                        # free relayout; no pad / no output slice
    tile_hw, fp_bytes = _choose_tile(HW, C, pad, itemsize, target=1024)
    n_hw = pl.cdiv(HW, tile_hw)                     # ragged last block handled by Pallas masking

    kernel = functools.partial(
        _lrn_kernel, local_size=local_size, alpha=float(alpha), beta=float(beta))

    scratch_shapes = []
    if pad > 0:
        scratch_shapes.append(pltpu.VMEM((C + 2 * pad, tile_hw), jnp.float32))

    elems = N * C * HW
    cost = pl.CostEstimate(
        flops=int((local_size + 6) * elems),
        transcendentals=int(2 * elems),
        bytes_accessed=int(2 * elems * itemsize))

    vmem_limit = int(min(max(fp_bytes + (8 << 20), 16 << 20), 32 << 20))

    out3 = pl.pallas_call(
        kernel,
        out_shape=jax.ShapeDtypeStruct((N, C, HW), x.dtype),
        grid_spec=pltpu.PrefetchScalarGridSpec(
            num_scalar_prefetch=0,
            grid=(N, n_hw),                          # both parallel (megacore / v7x 2-TC friendly)
            in_specs=[pl.BlockSpec((None, C, tile_hw), lambda n, t: (n, 0, t))],
            out_specs=pl.BlockSpec((None, C, tile_hw), lambda n, t: (n, 0, t)),
            scratch_shapes=scratch_shapes,
        ),
        compiler_params=pltpu.CompilerParams(
            dimension_semantics=("parallel", "parallel"),
            vmem_limit_bytes=vmem_limit),
        cost_estimate=cost,
    )(x3)

    return out3.reshape(N, C, H, W)


def _lrn_reference(x, *, local_size=1, alpha=1.0, beta=0.75):
    # Pure-JAX reference mirroring the PyTorch module (odd local_size).
    xf = x.astype(jnp.float32)
    x2 = xf * xf
    pad = (local_size - 1) // 2
    C = x.shape[1]
    acc = jnp.zeros_like(x2)
    for s in range(-pad, pad + 1):
        if abs(s) >= C:
            continue
        if s == 0:
            acc = acc + x2
        elif s > 0:
            acc = acc.at[:, : C - s].add(x2[:, s:])
        else:
            acc = acc.at[:, -s:].add(x2[:, : C + s])
    div = (1.0 + alpha * acc / float(local_size)) ** beta
    return (xf / div).astype(x.dtype)


if __name__ == "__main__":
    key = jax.random.PRNGKey(0)
    k1, k2, k3 = jax.random.split(key, 3)

    # Matches module defaults: local_size=1, alpha=1.0, beta=0.75, ACROSS_CHANNELS=True.
    x = jax.random.normal(k1, (2, 4, 16, 16), dtype=jnp.float32)
    out = jax.block_until_ready(lrn(x, local_size=1, alpha=1.0, beta=0.75))
    ref = _lrn_reference(x, local_size=1, alpha=1.0, beta=0.75)
    assert out.shape == x.shape and out.dtype == x.dtype
    assert jnp.allclose(out, ref, atol=1e-5, rtol=1e-4)

    # Non-trivial window: local_size=5, C not a multiple of the sublane pack, HW < 128.
    x_b = jax.random.normal(k2, (2, 6, 8, 8), dtype=jnp.float32)
    out_b = jax.block_until_ready(lrn(x_b, local_size=5, alpha=2e-4, beta=0.75))
    ref_b = _lrn_reference(x_b, local_size=5, alpha=2e-4, beta=0.75)
    assert out_b.shape == x_b.shape and out_b.dtype == x_b.dtype
    assert jnp.allclose(out_b, ref_b, atol=1e-5, rtol=1e-4)

    # HW not a multiple of 128 (exercises the ragged-edge masked block, no pad/slice passes)
    # and a non-default beta (exp/log path).
    x_c = jax.random.normal(k3, (2, 6, 10, 10), dtype=jnp.float32)
    out_c = jax.block_until_ready(lrn(x_c, local_size=3, alpha=1e-3, beta=0.5))
    ref_c = _lrn_reference(x_c, local_size=3, alpha=1e-3, beta=0.5)
    assert out_c.shape == x_c.shape and out_c.dtype == x_c.dtype
    assert jnp.allclose(out_c, ref_c, atol=1e-5, rtol=1e-4)

    print("KERNEL_OK")
</pallas_src>

<mosaic_0001>
module attributes {stable_mosaic.version = 11 : i64} {
  func.func @_lrn_kernel(%arg0: i32, %arg1: i32, %arg2: memref<1x4x256xf32, #tpu.memory_space<vmem>>, %arg3: memref<1x4x256xf32, #tpu.memory_space<vmem>>) attributes {dimension_semantics = [#tpu.dimension_semantics<parallel>, #tpu.dimension_semantics<parallel>], iteration_bounds = array<i64: 2, 1>, scalar_prefetch = 0 : i64, scratch_operands = 0 : i64, tpu.core_type = #tpu.core_type<tc>, window_params = [{transform_indices = @transform_0, window_bounds = array<i64: 1, 4, 256>}, {transform_indices = @transform_1, window_bounds = array<i64: 1, 4, 256>}]} {
    %c0 = arith.constant 0 : index
    %c0_0 = arith.constant 0 : index
    %c0_1 = arith.constant 0 : index
    %0 = vector.load %arg2[%c0, %c0_0, %c0_1] : memref<1x4x256xf32, #tpu.memory_space<vmem>>, vector<1x4x256xf32>
    %1 = vector.shape_cast %0 : vector<1x4x256xf32> to vector<4x256xf32>
    %2 = arith.mulf %1, %1 : vector<4x256xf32>
    %cst = arith.constant 1.000000e+00 : f32
    %3 = vector.broadcast %cst : f32 to vector<4x256xf32>
    %4 = arith.mulf %3, %2 : vector<4x256xf32>
    %cst_2 = arith.constant 1.000000e+00 : f32
    %5 = vector.broadcast %cst_2 : f32 to vector<4x256xf32>
    %6 = arith.addf %5, %4 : vector<4x256xf32>
    %7 = math.sqrt %6 : vector<4x256xf32>
    %8 = arith.mulf %6, %7 : vector<4x256xf32>
    %9 = math.rsqrt %8 : vector<4x256xf32>
    %10 = arith.mulf %1, %9 : vector<4x256xf32>
    %c0_3 = arith.constant 0 : index
    %c0_4 = arith.constant 0 : index
    %c0_5 = arith.constant 0 : index
    %11 = vector.load %arg3[%c0_3, %c0_4, %c0_5] : memref<1x4x256xf32, #tpu.memory_space<vmem>>, vector<1x4x256xf32>
    %12 = vector.shape_cast %11 : vector<1x4x256xf32> to vector<4x256xf32>
    %13 = vector.shape_cast %10 : vector<4x256xf32> to vector<1x4x256xf32>
    tpu.vector_store %arg3[%c0_3, %c0_4, %c0_5], %13 {strides = array<i32>} : memref<1x4x256xf32, #tpu.memory_space<vmem>>, vector<1x4x256xf32>,
    return
  }
  func.func @transform_0(%arg0: i32, %arg1: i32) -> (i32, i32, i32) {
    %c0_i32 = arith.constant 0 : i32
    %c0_i32_0 = arith.constant 0 : i32
    return %arg0, %c0_i32, %arg1 : i32, i32, i32
  }
  func.func @transform_1(%arg0: i32, %arg1: i32) -> (i32, i32, i32) {
    %c0_i32 = arith.constant 0 : i32
    %c0_i32_0 = arith.constant 0 : i32
    return %arg0, %c0_i32, %arg1 : i32, i32, i32
  }
}

</mosaic_0001>

<bundles_post_ra>
// kernel: tpu_custom_call.1
= control target key start
LH: loop header
LB: loop body
LE: loop exit
PB: predicated region body
PF: predicated region fallthrough
CT: control target
= control target key end

     0   :  { %6 = vsyncpa [#allocation3], 0  ;;  %s649_s0 = inlined_call_operand.hbm [shape: f32[2,4,256], index: 0, kind: input, shape index: {}]   ;;  %s650_s1 = inlined_call_operand.hbm [shape: f32[2,4,256], index: 1, kind: output, shape index: {}]  }
   0x1   :  { %8 = vsyncpa [#allocation3 + $0x1], 0 }
   0x2   :  { %9 = vsyncpa [#allocation4], 0 }
   0x3   :  { %11 = vsyncpa [#allocation4 + $0x1], 0  ;;  %s477_s6 = smov 0   ;;  %s479_s7 = smov 0  }
   0x4   :  { %s481_s8 = smov 0   ;;  %s483_s9 = smov 0  }
   0x5   :  { %s485_s10 = smov 0   ;;  %s487_s11 = smov 0  }
   0x6 LB: > { %s268_s12 = sadd.s32 4294967295, %s463_s11   ;;  %s269_s13 = sadd.s32 4294967294, %s463_s11   ;;  %s463_s11 = sphi %s487_s11, %s17_s11   ;;  %s459_s10 = sphi %s485_s10, %s666_s10   ;;  %s455_s9 = sphi %s483_s9, %s665_s9   ;;  %s451_s8 = sphi %s481_s8, %s664_s8   ;;  %s447_s7 = sphi %s479_s7, %s663_s7   ;;  %s443_s6 = sphi %s477_s6, %s662_s6  }
   0x7   : > { %s29_s14 = sadd.s32 1, %s459_s10  ;;  %s38_s15 = sadd.s32 1, %s451_s8 }
   0x8   : > { %p31_p0 = scmp.ge.s32.totalorder %s29_s14, 2  ;;  %p45_p1 = scmp.ne.s32.totalorder %s451_s8, %s447_s7 }
   0x9   : > { %p46_p2 = scmp.eq.s32.totalorder %s463_s11, 0  ;;  %p51_p3 = scmp.ne.s32.totalorder %s447_s7, %s443_s6 }
   0xa   : > { %s668_s14 = smov (%p31_p0, %s29_s14), 0  ;;  %p52_p5 = scmp.eq.s32.totalorder %s268_s12, 0 }
   0xb   : > { %p518_p4 = por %p46_p2, %p45_p1  ;;  %s33_s17 = ssub.s32 %s459_s10, %s668_s14 }
   0xc   : > { %p77_p6 = scmp.eq.s32.totalorder %s268_s12, 1  ;;  %p36_p7 = scmp.eq.s32.totalorder %s33_s17, 0 }
   0xd   : > { %p524_p8 = por %p52_p5, %p51_p3  ;;  %p83_p10 = scmp.eq.s32.totalorder %s269_s13, 1 }
   0xe   : > { %p528_p9 = por %p77_p6, %p45_p1  ;;  %p297_p13 = scmp.lt.s32.totalorder %s463_s11, 2 }
   0xf   : > { %s533_s20 = scalar_select %p36_p7, %s451_s8, %s38_s15  }
  0x10   : > { %s654_s19 = scalar_select %p528_p9, 1, 0 }
  0x11   : > { %p535_p11 = por %p83_p10, %p51_p3  ;;  %s103_s22 = sand.u32 1, %s451_s8  }
  0x12   : > { %s272_s23 = sshll.u32 %s103_s22, 3  ;;  %s283_s24 = sshll.u32 %s459_s10, 7 }
  0x13   : > { %s655_s21 = scalar_select %p535_p11, 1, 0 }
  0x14   : > { %s546_s27 = scalar_lea.hbm %s649_s0, %s283_s24  ;;  %s107_s28 = scalar_lea.vmem [#allocation2], %s272_s23 }
  0x15   : > { %s117_s29 = sshll.u32 %s107_s28, 4  ;;  %p552_p0 = pnand %p297_p13, %p518_p4  ;;  %s548_s29 = int_to_ptr.vmem [resolvable:$true] %s117_s29 }
  0x16   : > { %s104_s2 = scalar_lea.sflag [#allocation3], %s103_s22  ;;  %s351_s3 = scalar_lea.hbm %s546_s27, 128 }
  0x17   : > { %p352_p3 = scmp.ne.s32.totalorder %s546_s27, %s351_s3  ;;  %p353_p5 = pneg %p552_p0 }
  0x18   : > { %s356_s12 = scalar_lea.hbm %s649_s0, 256  ;;  %p357_p4 = scmp.lt.u32.totalorder %s546_s27, %s649_s0 }
  0x19   : > { %p354_p6 = pnand %p353_p5, %p352_p3  ;;  %p358_p10 = scmp.lt.u32.totalorder %s356_s12, %s351_s3 }
  0x1a   : > { %p360_p12 = scmp.lt.u32.totalorder %s351_s3, %s546_s27 }
  0x1b   : > { %p355_p7 = pneg %p354_p6  ;;  %p359_p13 = por %p358_p10, %p357_p4 }
  0x1d   : > { %p361_p1 = por %p360_p12, %p359_p13 }
  0x1f   : > { %p362_p2 = pnand %p361_p1, %p355_p7 }
  0x21   : > { %365 = shalt.err (!%p362_p2)
}
  0x22   : > { %s366_s16 = scalar_lea.vmem %s548_s29, 128  ;;  %s465_s17 = smov [#allocation2]  }
  0x23   : > { %p367_p3 = scmp.ne.s32.totalorder %s548_s29, %s366_s16  ;;  %s371_s22 = sshll.u32 %s465_s17, 4  ;;  %s372_s22 = int_to_ptr.vmem [resolvable:$false] %s371_s22 }
  0x24   : > { %s373_s23 = scalar_lea.vmem %s372_s22, 256  ;;  %p374_p9 = scmp.lt.s32.totalorder %s548_s29, %s372_s22 }
  0x25   : > { %p369_p6 = pnand %p367_p3, %p353_p5  ;;  %p375_p4 = scmp.lt.s32.totalorder %s373_s23, %s366_s16 }
  0x27   : > { %p370_p11 = pneg %p369_p6  ;;  %p376_p10 = por %p375_p4, %p374_p9 }
  0x29   : > { %p377_p12 = pnand %p376_p10, %p370_p11 }
  0x2b   : > { %380 = shalt.err (!%p377_p12)
}
  0x2c   : > { %292 = dma.hbm_to_vmem [thread:$0]  (!%p552_p0), %s546_s27, 128, %s548_s29, %s104_s2  }
  0x2d   : > { %p657_p1 = scmp.lt.s32.totalorder %s463_s11, 3  ;;  %p658_p2 = scmp.ge.s32.totalorder %s463_s11, 1 }
  0x2f   : > { %p123_p5 = pnand %p658_p2, %p657_p1 }
  0x30   : > { %s588_s24 = sand.u32 (!%p123_p5), 1, %s447_s7  }
  0x31   : > { %126 = sbr.rel (%p123_p5) target bundleno = 106 (0x6a), region = 24  ;;  %s276_s25 = sshll.u32 (!%p123_p5), %s588_s24, 3 }
  0x32   : > { %s129_s26 = scalar_lea.sflag (!%p123_p5), [#allocation3], %s588_s24  ;;  %s132_s28 = scalar_lea.vmem (!%p123_p5), [#allocation2], %s276_s25 }
  0x38   : > { %434 = dma.done.wait (%p524_p8), %s129_s26, 128  }
  0x39   : > { %436 = vsyncadd (%p524_p8), %s129_s26, 4294967168  ;;  %v153_v0 = vld [vmem:[%s132_s28] sm:$0xff]  ;;  %s150_s27 = scalar_lea.vmem [#allocation5], %s276_s25  ;;  %s284_s18 = sshll.u32 %s455_s9, 7 }
  0x3a   : > { %v154_v1 = vmul.f32 %v153_v0, %v153_v0  ;;  %s184_s29 = sshll.u32 %s150_s27, 4  ;;  %s602_s3 = scalar_lea.hbm %s650_s1, %s284_s18  ;;  %s597_s29 = int_to_ptr.vmem [resolvable:$true] %s184_s29 }
  0x3b   : > { %s168_s4 = scalar_lea.sflag [#allocation4], %s588_s24  ;;  %s381_s5 = scalar_lea.vmem %s597_s29, 128 }
  0x3c   : > { %v155_v2 = vadd.f32 1.0, %v154_v1  ;;  %p382_p8 = scmp.ne.s32.totalorder %s597_s29, %s381_s5  ;;  %p659_p9 = scmp.ne.s32.totalorder %s654_s19, 0 }
  0x3d   : > { %s466_s9 = smov [#allocation5]  }
  0x3e   : > { %347 = vrsqrt.f32 %v155_v2  ;;  %vm158_vm0 = vcmp.eq.f32.partialorder %v155_v2, inf  ;;  %v161_v4 = vand.u32 2147483648, %v155_v2  ;;  %vm160_vm1 = vcmp.eq.f32.partialorder %v155_v2, 0.0  ;;  %p383_p11 = pnand %p382_p8, %p659_p9  ;;  %s385_s12 = sshll.u32 %s466_s9, 4  ;;  %s386_s12 = int_to_ptr.vmem [resolvable:$false] %s385_s12 }
  0x3f   : > { %s387_s13 = scalar_lea.vmem %s386_s12, 256  ;;  %p388_p7 = scmp.lt.s32.totalorder %s597_s29, %s386_s12 }
  0x40   : > { %p384_p0 = pneg %p383_p11  ;;  %p389_p13 = scmp.lt.s32.totalorder %s387_s13, %s381_s5 }
  0x42   : > { %p390_p3 = por %p389_p13, %p388_p7 }
  0x44   : > { %p391_p6 = pnand %p390_p3, %p384_p0 }
  0x48   : > { %v348_v3 = vpop.eup %347 }
  0x49   : > { %v157_v5 = vmul.f32 %v348_v3, %v155_v2 }
  0x4b   : > { %v159_v6 = vsel %vm158_vm0, %v155_v2, %v157_v5 }
  0x4c   : > { %v162_v7 = vsel %vm160_vm1, %v161_v4, %v159_v6 }
  0x4d   : > { %v163_v8 = vmul.f32 %v162_v7, %v155_v2 }
  0x4f   : > { %349 = vrsqrt.f32 %v163_v8 }
  0x59   : > { %v350_v9 = vpop.eup %349 }
  0x5a   : > { %v165_v10 = vmul.f32 %v350_v9, %v153_v0 }
  0x5c   : > { %166 = vst [vmem:[%s150_s27] sm:$0xff] %v165_v10 }
  0x5d   : > { %394 = shalt.err (!%p391_p6)
}
  0x5e   : > { %s395_s15 = scalar_lea.hbm %s602_s3, 128  ;;  %s399_s22 = scalar_lea.hbm %s650_s1, 256 }
  0x5f   : > { %p396_p4 = scmp.ne.s32.totalorder %s602_s3, %s395_s15  ;;  %p400_p1 = scmp.lt.u32.totalorder %s602_s3, %s650_s1 }
  0x60   : > { %p401_p2 = scmp.lt.u32.totalorder %s399_s22, %s395_s15  ;;  %p403_p8 = scmp.lt.u32.totalorder %s395_s15, %s602_s3 }
  0x61   : > { %p397_p10 = pnand %p396_p4, %p659_p9 }
  0x62   : > { %p402_p5 = por %p401_p2, %p400_p1 }
  0x63   : > { %p398_p12 = pneg %p397_p10 }
  0x64   : > { %p404_p11 = por %p403_p8, %p402_p5 }
  0x66   : > { %p405_p0 = pnand %p404_p11, %p398_p12 }
  0x68   : > { %408 = shalt.err (!%p405_p0)
}
  0x69   : > { %287 = dma.vmem_to_hbm [thread:$0]  (%p659_p9), %s597_s29, 128, %s602_s3, %s168_s4  }
  0x6a PF: > { %s196_s25 = sand.u32 1, %s443_s6   ;;  %p660_p7 = scmp.ne.s32.totalorder %s655_s21, 0 }
  0x6b   : > { %p661_p13 = scmp.ge.s32.totalorder %s463_s11, 2  ;;  %s197_s26 = scalar_lea.sflag [#allocation4], %s196_s25 }
  0x6d   : > { %p294_p3 = pnand %p661_p13, %p660_p7 }
  0x6f   : > { %438 = dma.done.wait (!%p294_p3), %s197_s26, 128  }
  0x70   : > { %440 = vsyncadd (!%p294_p3), %s197_s26, 4294967168  ;;  %s17_s11 = sadd.s32 1, %s463_s11   ;;  %s662_s6 = smov %s447_s7 }
  0x71   : > { %p14_p6 = scmp.ge.s32.totalorder %s17_s11, 4   ;;  %s663_s7 = smov %s451_s8 }
  0x72   : > { %s664_s8 = smov %s533_s20  ;;  %s665_s9 = smov %s459_s10 }
  0x73   : > { %s666_s10 = smov %s668_s14  ;;  %16 = sbr.rel (!%p14_p6) target bundleno = 6 (0x6), region = 69 }
  0x7a   :  { %202 = vsyncpa [#allocation3], 1 }
  0x7b   :  { %204 = vsyncpa [#allocation3 + $0x1], 1 }
  0x7c   :  { %205 = vsyncpa [#allocation4], 1 }
  0x7d   :  { %207 = vsyncpa [#allocation4 + $0x1], 1 }

</bundles_post_ra>
